<compile_context>
chip_gen: v7x
topology: tpu7x:2x2x1
jax: 0.10.0
libtpu: 0.0.40
codegen_flags: <defaults>
</compile_context>

<pallas_src>
import functools

import jax
import jax.numpy as jnp
import numpy as np
from jax.experimental import pallas as pl
from jax.experimental.pallas import tpu as pltpu


# ------------------------------ Pallas kernel ------------------------------- #

def _inception1_kernel(x_ref, const_ref, o_ref, *, H, W, cin, cout):
    """Fully fused Inception1 block for one image, channel-major layout.

    x_ref:     (1, cin, H*W)            input image (channels on sublanes, pixels on lanes)
    const_ref: (9*cout + cout, cin+1)   packed constants:
                 rows [0, 9*cout)  cols [0, cin)    -> Wbig   (all 9 folded weight blocks)
                 rows [0, 9*cout)  col  cin         -> bbig   (folded 1x1 bias per block)
                 rows [9*cout, +cout) col 0         -> b_out  (conv biases + BN shift)
    o_ref:     (1, cout, H*W)           output
    """
    HW = H * W
    K9 = 9 * cout

    wbig = const_ref[0:K9, 0:cin]                 # (9*cout, cin)
    bbig = const_ref[0:K9, cin:cin + 1]           # (9*cout, 1)
    bout = const_ref[K9:K9 + cout, 0:1]           # (cout, 1)

    x = x_ref[0, :, :]                            # (cin, HW)

    # Single MXU call: all nine folded (1x1 ⊗ 3x3-tap ⊗ 1x1 ⊗ BN-scale) weight blocks at once.
    g = jnp.dot(wbig, x, preferred_element_type=jnp.float32) + bbig      # (9*cout, HW)

    # In-kernel validity masks from a lane iota (no mask DMA; VALU filler under MXU latency).
    lane = jax.lax.broadcasted_iota(jnp.int32, (1, HW), 1)
    col = lane % W                                # W is a power of two here -> cheap

    # Centre tap (dy=dx=0) is always valid: no roll, no select.
    acc = g[4 * cout:5 * cout, :]                 # (cout, HW)

    for k in (0, 1, 2, 3, 5, 6, 7, 8):
        dy = k // 3 - 1
        dx = k % 3 - 1
        s = dy * W + dx
        blk = g[k * cout:(k + 1) * cout, :]                    # sublane-aligned value slice
        rolled = pltpu.roll(blk, shift=(-s) % HW, axis=1)      # tap[p] = blk[p + s]   (XLU)
        conds = []
        if dy == -1:
            conds.append(lane >= W)                # row >= 1
        elif dy == 1:
            conds.append(lane < (H - 1) * W)       # row <= H-2
        if dx == -1:
            conds.append(col >= 1)
        elif dx == 1:
            conds.append(col < W - 1)
        valid = conds[0]
        for extra in conds[1:]:
            valid = valid & extra
        acc = acc + jnp.where(valid, rolled, 0.0)

    # Folded bias (conv biases + BN shift) + ReLU.
    y = jnp.maximum(acc + bout, 0.0)
    o_ref[0, :, :] = y.astype(o_ref.dtype)


# ------------------------------ Module wrapper ------------------------------ #

def init_inception1_params(key, in_planes, beta, kernel_1_out, dtype=jnp.float32):
    cmid = int(in_planes * beta)
    ks = jax.random.split(key, 10)
    p = {
        # conv weights: 1x1 convs stored as (cin, cout); 3x3 stored HWIO (kh, kw, cin, cout)
        "w1": jax.random.normal(ks[0], (in_planes, cmid), dtype) * 0.2,
        "b1": jax.random.normal(ks[1], (1, cmid), dtype) * 0.1,
        "w3": jax.random.normal(ks[2], (3, 3, cmid, cmid), dtype) * 0.2,
        "b3": jax.random.normal(ks[3], (1, cmid), dtype) * 0.1,
        "w2": jax.random.normal(ks[4], (cmid, kernel_1_out), dtype) * 0.2,
        "b2": jax.random.normal(ks[5], (1, kernel_1_out), dtype) * 0.1,
        # BatchNorm2d params / running stats
        "gamma": 1.0 + 0.1 * jax.random.normal(ks[6], (kernel_1_out,), dtype),
        "beta": 0.1 * jax.random.normal(ks[7], (kernel_1_out,), dtype),
        "mean": 0.1 * jax.random.normal(ks[8], (kernel_1_out,), dtype),
        "var": 1.0 + 0.5 * jax.random.uniform(ks[9], (kernel_1_out,), dtype),
    }
    return p


@jax.jit
def inception1_forward(x_nchw, params):
    """Input/output in PyTorch NCHW; single fused Pallas kernel, channel-major internally."""
    eps = 1e-5
    n, cin, h, w = x_nchw.shape
    cmid = params["w1"].shape[1]
    cout = params["w2"].shape[1]
    hw = h * w
    k9 = 9 * cout

    # ---- exact algebraic folding (wrapper side, all f32) ----
    scale = params["gamma"] / jnp.sqrt(params["var"] + eps)                     # (cout,)
    shift = params["beta"] - params["mean"] * scale                             # (cout,)
    # f[k, c, m] = sum_q w3[ky,kx,m,q] * w2[q,c] * scale[c]   (3x3 ⊗ trailing 1x1 ⊗ BN scale)
    f = jnp.einsum("yxmq,qc->yxcm", params["w3"], params["w2"])
    f = f * scale[None, None, :, None]
    f = f.reshape(9, cout, cmid)
    # fold the leading 1x1 conv:  f @ (w1^T x + b1) = (f @ w1^T) x + f @ b1
    wbig = jnp.einsum("kcm,im->kci", f, params["w1"]).reshape(k9, cin)          # (9*cout, cin)
    bbig = jnp.einsum("kcm,m->kc", f, params["b1"][0]).reshape(k9, 1)           # (9*cout, 1)
    bout = ((params["b3"] @ params["w2"] + params["b2"]) * scale + shift).reshape(cout, 1)

    # pack all constant operands into one array -> a single constant DMA
    const = jnp.zeros((k9 + cout, cin + 1), jnp.float32)
    const = const.at[:k9, :cin].set(wbig)
    const = const.at[:k9, cin:cin + 1].set(bbig)
    const = const.at[k9:, 0:1].set(bout)

    # NCHW read directly: collapse (H, W) -> H*W (free reshape, no transpose).
    x_flat = x_nchw.reshape(n, cin, hw)

    kern = functools.partial(_inception1_kernel, H=h, W=w, cin=cin, cout=cout)
    y = pl.pallas_call(
        kern,
        out_shape=jax.ShapeDtypeStruct((n, cout, hw), x_nchw.dtype),
        grid=(n,),
        in_specs=[
            pl.BlockSpec((1, cin, hw), lambda i: (i, 0, 0)),
            pl.BlockSpec((k9 + cout, cin + 1), lambda i: (0, 0)),
        ],
        out_specs=pl.BlockSpec((1, cout, hw), lambda i: (i, 0, 0)),
        compiler_params=pltpu.CompilerParams(dimension_semantics=("parallel",)),
    )(x_flat, const)

    return y.reshape(n, cout, h, w)                                             # NCHW out


# --------------------------- pure-JAX reference ----------------------------- #

def inception1_reference(x_nchw, params):
    eps = 1e-5
    x = jnp.transpose(x_nchw, (0, 2, 3, 1))                  # NHWC
    dn = ("NHWC", "HWIO", "NHWC")
    w1 = params["w1"][None, None]                            # 1x1 HWIO
    w2 = params["w2"][None, None]
    y = jax.lax.conv_general_dilated(x, w1, (1, 1), "VALID", dimension_numbers=dn)
    y = y + params["b1"][0]
    y = jax.lax.conv_general_dilated(y, params["w3"], (1, 1), "SAME", dimension_numbers=dn)
    y = y + params["b3"][0]
    y = jax.lax.conv_general_dilated(y, w2, (1, 1), "VALID", dimension_numbers=dn)
    y = y + params["b2"][0]
    y = (y - params["mean"]) / jnp.sqrt(params["var"] + eps) * params["gamma"] + params["beta"]
    y = jnp.maximum(y, 0.0)
    return jnp.transpose(y, (0, 3, 1, 2))


# ----------------------------------- main ----------------------------------- #

if __name__ == "__main__":
    in_planes, beta, kernel_1_out = 4, 0.5, 8
    batch, spatial = 2, 16

    key = jax.random.PRNGKey(0)
    k_x, k_p = jax.random.split(key)
    x = jax.random.normal(k_x, (batch, in_planes, spatial, spatial), jnp.float32)
    params = init_inception1_params(k_p, in_planes, beta, kernel_1_out)

    out = inception1_forward(x, params)
    out = jax.block_until_ready(out)

    ref = jax.block_until_ready(inception1_reference(x, params))
    np.testing.assert_allclose(np.asarray(out), np.asarray(ref), atol=1e-4, rtol=1e-4)
    assert out.shape == (batch, kernel_1_out, spatial, spatial)

    print("KERNEL_OK")
</pallas_src>

<mosaic_0001>
module attributes {stable_mosaic.version = 11 : i64} {
  func.func @_inception1_kernel(%arg0: i32, %arg1: memref<1x4x256xf32, #tpu.memory_space<vmem>>, %arg2: memref<80x5xf32, #tpu.memory_space<vmem>>, %arg3: memref<1x8x256xf32, #tpu.memory_space<vmem>>) attributes {dimension_semantics = [#tpu.dimension_semantics<parallel>], iteration_bounds = array<i64: 2>, scalar_prefetch = 0 : i64, scratch_operands = 0 : i64, tpu.core_type = #tpu.core_type<tc>, window_params = [{transform_indices = @transform_0, window_bounds = array<i64: 1, 4, 256>}, {pipeline_mode = #tpu.pipeline_mode<synchronous>, transform_indices = @transform_1, window_bounds = array<i64: 80, 5>}, {transform_indices = @transform_2, window_bounds = array<i64: 1, 8, 256>}]} {
    %c0 = arith.constant 0 : index
    %c0_0 = arith.constant 0 : index
    %0 = vector.load %arg2[%c0, %c0_0] : memref<80x5xf32, #tpu.memory_space<vmem>>, vector<72x4xf32>
    %c0_1 = arith.constant 0 : index
    %c4 = arith.constant 4 : index
    %1 = vector.load %arg2[%c0_1, %c4] : memref<80x5xf32, #tpu.memory_space<vmem>>, vector<72x1xf32>
    %c72 = arith.constant 72 : index
    %c0_2 = arith.constant 0 : index
    %2 = vector.load %arg2[%c72, %c0_2] : memref<80x5xf32, #tpu.memory_space<vmem>>, vector<8x1xf32>
    %c0_3 = arith.constant 0 : index
    %c0_4 = arith.constant 0 : index
    %c0_5 = arith.constant 0 : index
    %3 = vector.load %arg1[%c0_3, %c0_4, %c0_5] : memref<1x4x256xf32, #tpu.memory_space<vmem>>, vector<1x4x256xf32>
    %4 = vector.shape_cast %3 : vector<1x4x256xf32> to vector<4x256xf32>
    %cst = arith.constant dense<0.000000e+00> : vector<72x256xf32>
    %5 = tpu.matmul %0, %4, %cst {dimension_numbers = #tpu.dot_dimension_numbers<[1], [0], [0], [1], [0, 0, 1, 1], [], []>} : vector<72x4xf32>, vector<4x256xf32>, vector<72x256xf32> -> vector<72x256xf32>
    %6 = vector.broadcast %1 : vector<72x1xf32> to vector<72x256xf32>
    %7 = arith.addf %5, %6 : vector<72x256xf32>
    %8 = tpu.iota {dimensions = array<i32: 1>} : vector<1x256xi32>
    %c16_i32 = arith.constant 16 : i32
    %c0_i32 = arith.constant 0 : i32
    %9 = arith.cmpi eq, %c16_i32, %c0_i32 : i32
    %c1_i32 = arith.constant 1 : i32
    %10 = arith.select %9, %c1_i32, %c16_i32 : i32
    %11 = vector.broadcast %10 : i32 to vector<1x256xi32>
    %12 = arith.remsi %8, %11 : vector<1x256xi32>
    %c0_i32_6 = arith.constant 0 : i32
    %13 = vector.broadcast %c0_i32_6 : i32 to vector<1x256xi32>
    %14 = arith.cmpi ne, %12, %13 : vector<1x256xi32>
    %c0_i32_7 = arith.constant 0 : i32
    %15 = vector.broadcast %c0_i32_7 : i32 to vector<1x256xi32>
    %16 = arith.cmpi slt, %12, %15 : vector<1x256xi32>
    %c0_i32_8 = arith.constant 0 : i32
    %17 = arith.cmpi slt, %10, %c0_i32_8 : i32
    %18 = vector.broadcast %17 : i1 to vector<1x256xi1>
    %19 = vector.broadcast %18 : vector<1x256xi1> to vector<1x256xi1>
    %20 = arith.xori %16, %19 : vector<1x256xi1>
    %21 = arith.andi %20, %14 : vector<1x256xi1>
    %22 = vector.broadcast %10 : i32 to vector<1x256xi32>
    %23 = arith.addi %12, %22 : vector<1x256xi32>
    %24 = arith.select %21, %23, %12 : vector<1x256xi1>, vector<1x256xi32>
    %25 = vector.extract_strided_slice %7 {offsets = [32, 0], sizes = [8, 256], strides = [1, 1]} : vector<72x256xf32> to vector<8x256xf32>
    %26 = vector.extract_strided_slice %7 {offsets = [0, 0], sizes = [8, 256], strides = [1, 1]} : vector<72x256xf32> to vector<8x256xf32>
    %c17_i32 = arith.constant 17 : i32
    %27 = tpu.dynamic_rotate %26 by %c17_i32 dim 1 : vector<8x256xf32>, i32 -> vector<8x256xf32>
    %c16_i32_9 = arith.constant 16 : i32
    %28 = vector.broadcast %c16_i32_9 : i32 to vector<1x256xi32>
    %29 = arith.cmpi sge, %8, %28 : vector<1x256xi32>
    %c1_i32_10 = arith.constant 1 : i32
    %30 = vector.broadcast %c1_i32_10 : i32 to vector<1x256xi32>
    %31 = arith.cmpi sge, %24, %30 : vector<1x256xi32>
    %32 = arith.andi %29, %31 : vector<1x256xi1>
    %cst_11 = arith.constant 0.000000e+00 : f32
    %33 = vector.shape_cast %32 : vector<1x256xi1> to vector<1x256xi1>
    %34 = vector.broadcast %33 : vector<1x256xi1> to vector<8x256xi1>
    %35 = vector.broadcast %cst_11 : f32 to vector<8x256xf32>
    %36 = arith.select %34, %27, %35 : vector<8x256xi1>, vector<8x256xf32>
    %37 = arith.addf %25, %36 : vector<8x256xf32>
    %38 = vector.extract_strided_slice %7 {offsets = [8, 0], sizes = [8, 256], strides = [1, 1]} : vector<72x256xf32> to vector<8x256xf32>
    %c16_i32_12 = arith.constant 16 : i32
    %39 = tpu.dynamic_rotate %38 by %c16_i32_12 dim 1 : vector<8x256xf32>, i32 -> vector<8x256xf32>
    %c16_i32_13 = arith.constant 16 : i32
    %40 = vector.broadcast %c16_i32_13 : i32 to vector<1x256xi32>
    %41 = arith.cmpi sge, %8, %40 : vector<1x256xi32>
    %cst_14 = arith.constant 0.000000e+00 : f32
    %42 = vector.shape_cast %41 : vector<1x256xi1> to vector<1x256xi1>
    %43 = vector.broadcast %42 : vector<1x256xi1> to vector<8x256xi1>
    %44 = vector.broadcast %cst_14 : f32 to vector<8x256xf32>
    %45 = arith.select %43, %39, %44 : vector<8x256xi1>, vector<8x256xf32>
    %46 = arith.addf %37, %45 : vector<8x256xf32>
    %47 = vector.extract_strided_slice %7 {offsets = [16, 0], sizes = [8, 256], strides = [1, 1]} : vector<72x256xf32> to vector<8x256xf32>
    %c15_i32 = arith.constant 15 : i32
    %48 = tpu.dynamic_rotate %47 by %c15_i32 dim 1 : vector<8x256xf32>, i32 -> vector<8x256xf32>
    %c16_i32_15 = arith.constant 16 : i32
    %49 = vector.broadcast %c16_i32_15 : i32 to vector<1x256xi32>
    %50 = arith.cmpi sge, %8, %49 : vector<1x256xi32>
    %c15_i32_16 = arith.constant 15 : i32
    %51 = vector.broadcast %c15_i32_16 : i32 to vector<1x256xi32>
    %52 = arith.cmpi slt, %24, %51 : vector<1x256xi32>
    %53 = arith.andi %50, %52 : vector<1x256xi1>
    %cst_17 = arith.constant 0.000000e+00 : f32
    %54 = vector.shape_cast %53 : vector<1x256xi1> to vector<1x256xi1>
    %55 = vector.broadcast %54 : vector<1x256xi1> to vector<8x256xi1>
    %56 = vector.broadcast %cst_17 : f32 to vector<8x256xf32>
    %57 = arith.select %55, %48, %56 : vector<8x256xi1>, vector<8x256xf32>
    %58 = arith.addf %46, %57 : vector<8x256xf32>
    %59 = vector.extract_strided_slice %7 {offsets = [24, 0], sizes = [8, 256], strides = [1, 1]} : vector<72x256xf32> to vector<8x256xf32>
    %c1_i32_18 = arith.constant 1 : i32
    %60 = tpu.dynamic_rotate %59 by %c1_i32_18 dim 1 : vector<8x256xf32>, i32 -> vector<8x256xf32>
    %c1_i32_19 = arith.constant 1 : i32
    %61 = vector.broadcast %c1_i32_19 : i32 to vector<1x256xi32>
    %62 = arith.cmpi sge, %24, %61 : vector<1x256xi32>
    %cst_20 = arith.constant 0.000000e+00 : f32
    %63 = vector.shape_cast %62 : vector<1x256xi1> to vector<1x256xi1>
    %64 = vector.broadcast %63 : vector<1x256xi1> to vector<8x256xi1>
    %65 = vector.broadcast %cst_20 : f32 to vector<8x256xf32>
    %66 = arith.select %64, %60, %65 : vector<8x256xi1>, vector<8x256xf32>
    %67 = arith.addf %58, %66 : vector<8x256xf32>
    %68 = vector.extract_strided_slice %7 {offsets = [40, 0], sizes = [8, 256], strides = [1, 1]} : vector<72x256xf32> to vector<8x256xf32>
    %c255_i32 = arith.constant 255 : i32
    %69 = tpu.dynamic_rotate %68 by %c255_i32 dim 1 : vector<8x256xf32>, i32 -> vector<8x256xf32>
    %c15_i32_21 = arith.constant 15 : i32
    %70 = vector.broadcast %c15_i32_21 : i32 to vector<1x256xi32>
    %71 = arith.cmpi slt, %24, %70 : vector<1x256xi32>
    %cst_22 = arith.constant 0.000000e+00 : f32
    %72 = vector.shape_cast %71 : vector<1x256xi1> to vector<1x256xi1>
    %73 = vector.broadcast %72 : vector<1x256xi1> to vector<8x256xi1>
    %74 = vector.broadcast %cst_22 : f32 to vector<8x256xf32>
    %75 = arith.select %73, %69, %74 : vector<8x256xi1>, vector<8x256xf32>
    %76 = arith.addf %67, %75 : vector<8x256xf32>
    %77 = vector.extract_strided_slice %7 {offsets = [48, 0], sizes = [8, 256], strides = [1, 1]} : vector<72x256xf32> to vector<8x256xf32>
    %c241_i32 = arith.constant 241 : i32
    %78 = tpu.dynamic_rotate %77 by %c241_i32 dim 1 : vector<8x256xf32>, i32 -> vector<8x256xf32>
    %c240_i32 = arith.constant 240 : i32
    %79 = vector.broadcast %c240_i32 : i32 to vector<1x256xi32>
    %80 = arith.cmpi slt, %8, %79 : vector<1x256xi32>
    %c1_i32_23 = arith.constant 1 : i32
    %81 = vector.broadcast %c1_i32_23 : i32 to vector<1x256xi32>
    %82 = arith.cmpi sge, %24, %81 : vector<1x256xi32>
    %83 = arith.andi %80, %82 : vector<1x256xi1>
    %cst_24 = arith.constant 0.000000e+00 : f32
    %84 = vector.shape_cast %83 : vector<1x256xi1> to vector<1x256xi1>
    %85 = vector.broadcast %84 : vector<1x256xi1> to vector<8x256xi1>
    %86 = vector.broadcast %cst_24 : f32 to vector<8x256xf32>
    %87 = arith.select %85, %78, %86 : vector<8x256xi1>, vector<8x256xf32>
    %88 = arith.addf %76, %87 : vector<8x256xf32>
    %89 = vector.extract_strided_slice %7 {offsets = [56, 0], sizes = [8, 256], strides = [1, 1]} : vector<72x256xf32> to vector<8x256xf32>
    %c240_i32_25 = arith.constant 240 : i32
    %90 = tpu.dynamic_rotate %89 by %c240_i32_25 dim 1 : vector<8x256xf32>, i32 -> vector<8x256xf32>
    %c240_i32_26 = arith.constant 240 : i32
    %91 = vector.broadcast %c240_i32_26 : i32 to vector<1x256xi32>
    %92 = arith.cmpi slt, %8, %91 : vector<1x256xi32>
    %cst_27 = arith.constant 0.000000e+00 : f32
    %93 = vector.shape_cast %92 : vector<1x256xi1> to vector<1x256xi1>
    %94 = vector.broadcast %93 : vector<1x256xi1> to vector<8x256xi1>
    %95 = vector.broadcast %cst_27 : f32 to vector<8x256xf32>
    %96 = arith.select %94, %90, %95 : vector<8x256xi1>, vector<8x256xf32>
    %97 = arith.addf %88, %96 : vector<8x256xf32>
    %98 = vector.extract_strided_slice %7 {offsets = [64, 0], sizes = [8, 256], strides = [1, 1]} : vector<72x256xf32> to vector<8x256xf32>
    %c239_i32 = arith.constant 239 : i32
    %99 = tpu.dynamic_rotate %98 by %c239_i32 dim 1 : vector<8x256xf32>, i32 -> vector<8x256xf32>
    %c240_i32_28 = arith.constant 240 : i32
    %100 = vector.broadcast %c240_i32_28 : i32 to vector<1x256xi32>
    %101 = arith.cmpi slt, %8, %100 : vector<1x256xi32>
    %c15_i32_29 = arith.constant 15 : i32
    %102 = vector.broadcast %c15_i32_29 : i32 to vector<1x256xi32>
    %103 = arith.cmpi slt, %24, %102 : vector<1x256xi32>
    %104 = arith.andi %101, %103 : vector<1x256xi1>
    %cst_30 = arith.constant 0.000000e+00 : f32
    %105 = vector.shape_cast %104 : vector<1x256xi1> to vector<1x256xi1>
    %106 = vector.broadcast %105 : vector<1x256xi1> to vector<8x256xi1>
    %107 = vector.broadcast %cst_30 : f32 to vector<8x256xf32>
    %108 = arith.select %106, %99, %107 : vector<8x256xi1>, vector<8x256xf32>
    %109 = arith.addf %97, %108 : vector<8x256xf32>
    %110 = vector.broadcast %2 : vector<8x1xf32> to vector<8x256xf32>
    %111 = arith.addf %109, %110 : vector<8x256xf32>
    %cst_31 = arith.constant 0.000000e+00 : f32
    %112 = vector.broadcast %cst_31 : f32 to vector<8x256xf32>
    %113 = arith.maximumf %111, %112 : vector<8x256xf32>
    %c0_32 = arith.constant 0 : index
    %c0_33 = arith.constant 0 : index
    %c0_34 = arith.constant 0 : index
    %114 = vector.load %arg3[%c0_32, %c0_33, %c0_34] : memref<1x8x256xf32, #tpu.memory_space<vmem>>, vector<1x8x256xf32>
    %115 = vector.shape_cast %114 : vector<1x8x256xf32> to vector<8x256xf32>
    %116 = vector.shape_cast %113 : vector<8x256xf32> to vector<1x8x256xf32>
    tpu.vector_store %arg3[%c0_32, %c0_33, %c0_34], %116 {strides = array<i32>} : memref<1x8x256xf32, #tpu.memory_space<vmem>>, vector<1x8x256xf32>,
    return
  }
  func.func @transform_0(%arg0: i32) -> (i32, i32, i32) {
    %c0_i32 = arith.constant 0 : i32
    %c0_i32_0 = arith.constant 0 : i32
    %c0_i32_1 = arith.constant 0 : i32
    return %arg0, %c0_i32, %c0_i32_0 : i32, i32, i32
  }
  func.func @transform_1(%arg0: i32) -> (i32, i32) {
    %c0_i32 = arith.constant 0 : i32
    %c0_i32_0 = arith.constant 0 : i32
    %c0_i32_1 = arith.constant 0 : i32
    return %c0_i32, %c0_i32_0 : i32, i32
  }
  func.func @transform_2(%arg0: i32) -> (i32, i32, i32) {
    %c0_i32 = arith.constant 0 : i32
    %c0_i32_0 = arith.constant 0 : i32
    %c0_i32_1 = arith.constant 0 : i32
    return %arg0, %c0_i32, %c0_i32_0 : i32, i32, i32
  }
}

</mosaic_0001>

<bundles_post_ra>
// kernel: inception1_forward.1
= control target key start
LH: loop header
LB: loop body
LE: loop exit
PB: predicated region body
PF: predicated region fallthrough
CT: control target
= control target key end

     0   :  { %s658_s9 = smov 0   ;;  %s817_s0 = inlined_call_operand.vmem [shape: f32[2,4,256], index: 0, kind: input, shape index: {}]   ;;  %s818_s1 = inlined_call_operand.vmem [shape: f32[80,5], index: 1, kind: input, shape index: {}]   ;;  %s819_s2 = inlined_call_operand.vmem [shape: f32[2,8,256], index: 2, kind: output, shape index: {}]  }
   0x1 LB: > { %s574_s10 = sadd.s32 4294967295, %s630_s9   ;;  %p578_p0 = scmp.ge.s32.totalorder %s630_s9, 1  ;;  %s630_s9 = sphi %s658_s9, %s12_s9  }
   0x2   : > { %p112_p1 = scmp.lt.s32.totalorder %s630_s9, 3 }
   0x4   : > { %p113_p2 = pnand %p578_p0, %p112_p1 }
   0x5   : > { %p134_p3 = scmp.lt.s32.totalorder (!%p113_p2), %s574_s10, 1  ;;  %v632_v0 = vmov (!%p113_p2), 0.0   ;;  %v144_v1 = vld [vmem:[%s818_s1] sm:$0xff] (!%p113_p2)  ;;  %v146_v2 = vld [vmem:[%s818_s1 + $0x10] sm:$0xff] (!%p113_p2)  ;;  %v633_v3 = vmov (!%p113_p2), 4   ;;  %vm221_vm0 = vcmask (!%p113_p2), 1043456   ;;  %v345_v58 = vlaneseq (!%p113_p2) }
   0x6   : > { %116 = sbr.rel (%p113_p2) target bundleno = 388 (0x184), region = 28  ;;  %290 = vmatprep.mubr.f32.mxu0 (!%p113_p2), %v632_v0  ;;  %320 = vmatprep.mubr.f32.mxu1 (!%p113_p2), %v632_v0  ;;  %v145_v5 = vld [vmem:[%s818_s1 + $0x8] sm:$0xff] (!%p113_p2)  ;;  %v147_v6 = vld [vmem:[%s818_s1 + $0x18] sm:$0xff] (!%p113_p2)  ;;  %vm202_vm1 = vcmask (!%p113_p2), 31744   ;;  %v150_v9 = vld [vmem:[%s818_s1 + $0x30] sm:$0xff] (!%p113_p2)  ;;  %v634_v14 = vmov (!%p113_p2), 0  }
   0x7   : > { %619 = vset.pattern.permute.xlu0 (!%p113_p2), %v633_v3  ;;  %620 = vset.pattern.permute.xlu1 (!%p113_p2), %v633_v3  ;;  %v149_v8 = vld [vmem:[%s818_s1 + $0x28] sm:$0xff] (!%p113_p2)  ;;  %v151_v10 = vld [vmem:[%s818_s1 + $0x38] sm:$0xff] (!%p113_p2)  ;;  %v152_v11 = vld [vmem:[%s818_s1 + $0x40] sm:$0xff] (!%p113_p2)  ;;  %s635_s7 = smov (!%p113_p2), 17   ;;  %s636_s8 = smov (!%p113_p2), 127   ;;  %v713_v61 = vand.u32 (!%p113_p2), 127, %v345_v58 }
   0x8   : > { %157 = vperm.xlu0 (!%p113_p2), %619, %v144_v1   ;;  %167 = vperm.xlu1 (!%p113_p2), %620, %v146_v2   ;;  %v153_v12 = vld [vmem:[%s818_s1 + $0x48] sm:$0xff] (!%p113_p2)  ;;  %v148_v13 = vld [vmem:[%s818_s1 + $0x20] sm:$0xff] (!%p113_p2)  ;;  %s637_s11 = smov (!%p113_p2), 16   ;;  %s638_s12 = smov (!%p113_p2), 113  }
   0x9   : > { %s639_s13 = smov (!%p113_p2), 15   ;;  %s640_s14 = smov (!%p113_p2), 1   ;;  %v716_v63 = vadd.s32 (!%p113_p2), 128, %v713_v61  ;;  %vm376_vm2 = vcmp.lt.s32.totalorder (!%p113_p2), %v713_v61, 17  ;;  %vm379_vm3 = vcmp.ge.s32.totalorder (!%p113_p2), %v713_v61, 16  ;;  %vm397_vm5 = vcmp.lt.s32.totalorder (!%p113_p2), %v713_v61, 16 }
   0xa   : > { %s642_s16 = smov (!%p113_p2), 111   ;;  %vm412_vm9 = vcmp.lt.s32.totalorder (!%p113_p2), %v713_v61, 15  ;;  %vm446_vm12 = vcmp.lt.s32.totalorder (!%p113_p2), %v713_v61, 127  ;;  %vm431_vm13 = vcmp.lt.s32.totalorder (!%p113_p2), %v713_v61, 1  ;;  %vm461_vm14 = vcmp.lt.s32.totalorder (!%p113_p2), %v713_v61, 113 }
   0xb   : > { %v359_v3 = vand.u32 (!%p113_p2), 15, %v716_v63  ;;  %vm465_vm15 = vcmp.lt.s32.totalorder (!%p113_p2), %v716_v63, 240 }
   0xc   : > { %162 = vperm.xlu0 (!%p113_p2), %619, %v145_v5   ;;  %172 = vperm.xlu1 (!%p113_p2), %620, %v147_v6  }
   0xd   : > { %s835_s10 = smov (!%p134_p3, %s574_s10), 1  ;;  %vm727_vm6 = vcmp.ge.s32.totalorder %v359_v3, 1  ;;  %vm758_vm11 = vcmp.lt.s32.totalorder %v359_v3, 15 }
   0xe   : > { %s596_s15 = sshll.u32 %s835_s10, 3  ;;  %s597_s17 = sshll.u32 %s835_s10, 4 }
   0xf   : > { %s138_s18 = scalar_lea.vmem %s817_s0, %s596_s15  ;;  %s641_s15 = smov 112  }
  0x10   : > { %v154_v4 = vld [vmem:[%s138_s18] sm:$0xff]  ;;  %182 = vperm.xlu0 %619, %v149_v8   ;;  %187 = vperm.xlu1 %620, %v150_v9   ;;  %s143_s20 = scalar_lea.vmem %s819_s2, %s597_s17 }
  0x11   : > { %v201_v7 = vcombine.high %v154_v4, %v154_v4 }
  0x13   : > { %583 = vmatprep.subr.msk.mxu0 %vm221_vm0, %v201_v7  ;;  %598 = vmatprep.subr.msk.mxu1 %vm221_vm0, %v201_v7 }
  0x14   : > { %584 = vmatpush1.msk.msra.mxu0 %vm221_vm0, %v154_v4  ;;  %599 = vmatpush1.msk.msra.mxu1 %vm221_vm0, %v154_v4  ;;  %vm480_vm0 = vcmp.lt.s32.totalorder %v713_v61, 112 }
  0x15   : > { %585 = vmatmul.mubr.msk.f32.vlgmr.msra.gmra.mrb[0].mxu0 %vm202_vm1, %v144_v1  ;;  %590 = vmatmul.mubr.msk.f32.vlgmr.msra.gmra.mrb[0].mxu1 %vm202_vm1, %v149_v8  ;;  %v352_v1 = vand.u32 15, %v713_v61 }
  0x16   : > { %296 = vmatprep.mubr.f32.mxu0 %v632_v0  ;;  %326 = vmatprep.mubr.f32.mxu1 %v632_v0 }
  0x17   : > { %192 = vperm.xlu0 %619, %v151_v10   ;;  %197 = vperm.xlu1 %620, %v152_v11   ;;  %vm722_vm4 = vcmp.ge.s32.totalorder %v352_v1, 1  ;;  %vm745_vm8 = vcmp.lt.s32.totalorder %v352_v1, 15 }
  0x18   : > { %vm735_vm7 = vmand %vm379_vm3, %vm722_vm4 }
  0x19   : > { %586 = vmatmul.mubr.msk.f32.gmra.mrb[2].mxu0 %vm202_vm1, %v145_v5  ;;  %591 = vmatmul.mubr.msk.f32.gmra.mrb[2].mxu1 %vm202_vm1, %v150_v9  ;;  %vm754_vm10 = vmand %vm379_vm3, %vm745_vm8 }
  0x1a   : > { %302 = vmatprep.mubr.f32.mxu0 %v632_v0  ;;  %332 = vmatprep.mubr.f32.mxu1 %v632_v0 }
  0x1b   : > { %177 = vperm.xlu0 %619, %v148_v13   ;;  %621 = vset.pattern.permute.xlu1 %v634_v14 }
  0x1c   : > { %510 = vperm.xlu1 %621, %v153_v12  }
  0x1d   : > { %587 = vmatmul.mubr.msk.f32.gmra.mrb[4].mxu0 %vm202_vm1, %v146_v2  ;;  %592 = vmatmul.mubr.msk.f32.gmra.mrb[4].mxu1 %vm202_vm1, %v151_v10 }
  0x1e   : > { %308 = vmatprep.mubr.f32.mxu0 %v632_v0  ;;  %338 = vmatprep.mubr.f32.mxu1 %v632_v0 }
  0x1f   : > { %622 = vset.pattern.permute.xlu0 %v634_v14 }
  0x21   : > { %588 = vmatmul.mubr.msk.f32.gmra.mrb[6].mxu0 %vm202_vm1, %v147_v6  ;;  %593 = vmatmul.mubr.msk.f32.gmra.mrb[6].mxu1 %vm202_vm1, %v152_v11 }
  0x22   : > { %314 = vmatprep.mubr.f32.mxu0 %v632_v0 }
  0x25   : > { %589 = vmatmul.mubr.msk.f32.gmra.mrb[8].mxu0 %vm202_vm1, %v148_v13  ;;  %vm783_vm1 = vmand %vm465_vm15, %vm727_vm6 }
  0x87   : > { %v158_v15 = vpop.permute.xlu0 %157  ;;  %v168_v17 = vpop.permute.xlu1 %167 }
  0x8b   : > { %v163_v16 = vpop.permute.xlu0 %162  ;;  %v173_v25 = vpop.permute.xlu1 %172 }
  0x8f   : > { %v183_v24 = vpop.permute.xlu0 %182  ;;  %v188_v38 = vpop.permute.xlu1 %187 }
  0x96   : > { %v193_v51 = vpop.permute.xlu0 %192  ;;  %v198_v54 = vpop.permute.xlu1 %197 }
  0x9a   : > { %v178_v59 = vpop.permute.xlu0 %177 }
  0x9b   : > { %v711_v57 = vpop.permute.xlu1 %510 }
  0xe8   : > { %v292_v18 = vpop.f32.mrb[0].mxu0  ;;  %v322_v19 = vpop.f32.mrb[0].mxu1 }
  0xe9   : > { %v293_v20 = vadd.f32 %v292_v18, %v158_v15  ;;  %v294_v21 = vpop.f32.mrb[1].mxu0  ;;  %v324_v22 = vpop.f32.mrb[1].mxu1  ;;  %v323_v28 = vadd.f32 %v322_v19, %v183_v24 }
  0xea   : > { %v295_v23 = vadd.f32 %v294_v21, %v158_v15  ;;  %v325_v31 = vadd.f32 %v324_v22, %v183_v24 }
  0xeb   : > { %372 = vrot.lane.b32.xlu1 %v293_v20, %s635_s7 }
  0xec   : > { %v298_v26 = vpop.f32.mrb[2].mxu0  ;;  %v328_v27 = vpop.f32.mrb[2].mxu1  ;;  %374 = vrot.lane.b32.xlu0 %v295_v23, %s635_s7 }
  0xed   : > { %v300_v29 = vpop.f32.mrb[3].mxu0  ;;  %v330_v30 = vpop.f32.mrb[3].mxu1  ;;  %v299_v34 = vadd.f32 %v298_v26, %v163_v16  ;;  %v329_v41 = vadd.f32 %v328_v27, %v188_v38 }
  0xee   : > { %v301_v37 = vadd.f32 %v300_v29, %v163_v16  ;;  %v331_v44 = vadd.f32 %v330_v30, %v188_v38 }
  0xef   : > { %442 = vrot.lane.b32.xlu1 %v323_v28, %s636_s8 }
  0xf0   : > { %v304_v32 = vpop.f32.mrb[4].mxu0  ;;  %v334_v33 = vpop.f32.mrb[4].mxu1  ;;  %444 = vrot.lane.b32.xlu0 %v325_v31, %s636_s8 }
  0xf1   : > { %v306_v35 = vpop.f32.mrb[5].mxu0  ;;  %v336_v36 = vpop.f32.mrb[5].mxu1  ;;  %v305_v46 = vadd.f32 %v304_v32, %v168_v17  ;;  %v335_v53 = vadd.f32 %v334_v33, %v193_v51 }
  0xf2   : > { %v307_v48 = vadd.f32 %v306_v35, %v168_v17  ;;  %v337_v52 = vadd.f32 %v336_v36, %v193_v51 }
  0xf3   : > { %393 = vrot.lane.b32.xlu1 %v299_v34, %s637_s11 }
  0xf4   : > { %v310_v39 = vpop.f32.mrb[6].mxu0  ;;  %v340_v40 = vpop.f32.mrb[6].mxu1  ;;  %395 = vrot.lane.b32.xlu0 %v301_v37, %s637_s11 }
  0xf5   : > { %v312_v42 = vpop.f32.mrb[7].mxu0  ;;  %v342_v43 = vpop.f32.mrb[7].mxu1  ;;  %v311_v49 = vadd.f32 %v310_v39, %v173_v25  ;;  %v341_v56 = vadd.f32 %v340_v40, %v198_v54 }
  0xf6   : > { %v313_v50 = vadd.f32 %v312_v42, %v173_v25  ;;  %v343_v55 = vadd.f32 %v342_v43, %v198_v54 }
  0xf7   : > { %457 = vrot.lane.b32.xlu1 %v329_v41, %s638_s12 }
  0xf8   : > { %v316_v45 = vpop.f32.mrb[8].mxu0  ;;  %459 = vrot.lane.b32.xlu0 %v331_v44, %s638_s12 }
  0xf9   : > { %v318_v47 = vpop.f32.mrb[9].mxu0  ;;  %v317_v17 = vadd.f32 %v316_v45, %v178_v59 }
  0xfa   : > { %v319_v18 = vadd.f32 %v318_v47, %v178_v59 }
  0xfb   : > { %408 = vrot.lane.b32.xlu1 %v305_v46, %s639_s13 }
  0xfc   : > { %410 = vrot.lane.b32.xlu0 %v307_v48, %s639_s13 }
  0xff   : > { %427 = vrot.lane.b32.xlu1 %v311_v49, %s640_s14 }
 0x100   : > { %429 = vrot.lane.b32.xlu0 %v313_v50, %s640_s14 }
 0x103   : > { %478 = vrot.lane.b32.xlu1 %v337_v52, %s641_s15 }
 0x104   : > { %476 = vrot.lane.b32.xlu0 %v335_v53, %s641_s15 }
 0x107   : > { %493 = vrot.lane.b32.xlu1 %v343_v55, %s642_s16 }
 0x108   : > { %491 = vrot.lane.b32.xlu0 %v341_v56, %s642_s16 }
 0x15d   : > { %v373_v60 = vpop.permute.xlu1 %372 }
 0x15e   : > { %v375_v62 = vpop.permute.xlu0 %374 }
 0x15f   : > { %v377_v9 = vsel %vm376_vm2, %v373_v60, %v375_v62  ;;  %v378_v10 = vsel %vm376_vm2, %v375_v62, %v373_v60  ;;  %vm495_vm2 = vcmp.lt.s32.totalorder %v713_v61, 111 }
 0x160   : > { %v389_v14 = vsel %vm735_vm7, %v378_v10, 0.0  ;;  %v390_v15 = vsel %vm727_vm6, %v377_v9, 0.0 }
 0x161   : > { %v443_v0 = vpop.permute.xlu1 %442  ;;  %v391_v25 = vadd.f32 %v389_v14, %v317_v17  ;;  %v392_v26 = vadd.f32 %v390_v15, %v319_v18 }
 0x162   : > { %v445_v2 = vpop.permute.xlu0 %444 }
 0x163   : > { %v447_v34 = vsel %vm446_vm12, %v443_v0, %v445_v2  ;;  %v448_v35 = vsel %vm446_vm12, %v445_v2, %v443_v0 }
 0x164   : > { %v453_v49 = vsel %vm745_vm8, %v447_v34, 0.0  ;;  %v454_v50 = vsel %vm758_vm11, %v448_v35, 0.0 }
 0x165   : > { %v394_v4 = vpop.permute.xlu1 %393 }
 0x166   : > { %v396_v6 = vpop.permute.xlu0 %395 }
 0x167   : > { %v399_v13 = vsel %vm397_vm5, %v396_v6, %v394_v4  ;;  %v398_v22 = vsel %vm397_vm5, %v394_v4, %v396_v6 }
 0x168   : > { %v404_v23 = vsel %vm379_vm3, %v399_v13, 0.0  ;;  %v407_v32 = vadd.f32 %v398_v22, %v392_v26  ;;  %vm499_vm3 = vmand %vm465_vm15, %vm758_vm11 }
 0x169   : > { %v458_v11 = vpop.permute.xlu1 %457  ;;  %v406_v31 = vadd.f32 %v404_v23, %v391_v25 }
 0x16a   : > { %v460_v12 = vpop.permute.xlu0 %459 }
 0x16b   : > { %v462_v44 = vsel %vm461_vm14, %v458_v11, %v460_v12  ;;  %v463_v45 = vsel %vm461_vm14, %v460_v12, %v458_v11 }
 0x16c   : > { %v472_v55 = vsel %vm722_vm4, %v462_v44, 0.0  ;;  %v473_v56 = vsel %vm783_vm1, %v463_v45, 0.0 }
 0x16d   : > { %v409_v19 = vpop.permute.xlu1 %408 }
 0x16e   : > { %v411_v24 = vpop.permute.xlu0 %410 }
 0x16f   : > { %v413_v27 = vsel %vm412_vm9, %v409_v19, %v411_v24  ;;  %v414_v28 = vsel %vm412_vm9, %v411_v24, %v409_v19 }
 0x170   : > { %v423_v29 = vsel %vm754_vm10, %v414_v28, 0.0  ;;  %v424_v30 = vsel %vm758_vm11, %v413_v27, 0.0 }
 0x171   : > { %v428_v33 = vpop.permute.xlu1 %427  ;;  %v425_v37 = vadd.f32 %v423_v29, %v406_v31  ;;  %v426_v38 = vadd.f32 %v424_v30, %v407_v32 }
 0x172   : > { %v430_v36 = vpop.permute.xlu0 %429 }
 0x173   : > { %v432_v39 = vsel %vm431_vm13, %v428_v33, %v430_v36  ;;  %v433_v40 = vsel %vm431_vm13, %v430_v36, %v428_v33 }
 0x174   : > { %v438_v41 = vsel %vm722_vm4, %v433_v40, 0.0  ;;  %v439_v42 = vsel %vm727_vm6, %v432_v39, 0.0 }
 0x175   : > { %v440_v46 = vadd.f32 %v438_v41, %v425_v37  ;;  %v441_v47 = vadd.f32 %v439_v42, %v426_v38  ;;  %v479_v48 = vpop.permute.xlu1 %478 }
 0x176   : > { %v477_v51 = vpop.permute.xlu0 %476 }
 0x177   : > { %v455_v52 = vadd.f32 %v453_v49, %v440_v46  ;;  %v456_v53 = vadd.f32 %v454_v50, %v441_v47  ;;  %v482_v54 = vsel %vm480_vm0, %v479_v48, %v477_v51  ;;  %v481_v62 = vsel %vm480_vm0, %v477_v51, %v479_v48 }
 0x178   : > { %v488_v0 = vsel %vm465_vm15, %v482_v54, 0.0 }
 0x179   : > { %v474_v58 = vadd.f32 %v472_v55, %v455_v52  ;;  %v475_v59 = vadd.f32 %v473_v56, %v456_v53  ;;  %v494_v60 = vpop.permute.xlu1 %493 }
 0x17a   : > { %v492_v1 = vpop.permute.xlu0 %491 }
 0x17b   : > { %v489_v2 = vadd.f32 %v481_v62, %v474_v58  ;;  %v490_v3 = vadd.f32 %v488_v0, %v475_v59  ;;  %v496_v4 = vsel %vm495_vm2, %v492_v1, %v494_v60  ;;  %v497_v5 = vsel %vm495_vm2, %v494_v60, %v492_v1 }
 0x17c   : > { %v504_v6 = vsel %vm745_vm8, %v496_v4, 0.0  ;;  %v505_v7 = vsel %vm499_vm3, %v497_v5, 0.0 }
 0x17d   : > { %v506_v8 = vadd.f32 %v504_v6, %v489_v2  ;;  %v507_v9 = vadd.f32 %v505_v7, %v490_v3 }
 0x17f   : > { %v513_v10 = vadd.f32 %v711_v57, %v506_v8  ;;  %v514_v61 = vadd.f32 %v711_v57, %v507_v9 }
 0x181   : > { %v515_v63 = vmax.f32 %v513_v10, 0.0  ;;  %v516_v11 = vmax.f32 %v514_v61, 0.0 }
 0x183   : > { %517 = vst [vmem:[%s143_s20] sm:$0xff] %v515_v63  ;;  %518 = vst [vmem:[%s143_s20 + $0x8] sm:$0xff] %v516_v11 }
 0x184 PF: > { %s12_s9 = sadd.s32 1, %s630_s9  }
 0x185   : > { %p9_p4 = scmp.ge.s32.totalorder %s12_s9, 4  }
 0x187   :  { %11 = sbr.rel (!%p9_p4) target bundleno = 1 (0x1), region = 58 }

</bundles_post_ra>
